<compile_context>
chip_gen: v7x
topology: tpu7x:2x2x1
jax: 0.10.0
libtpu: 0.0.40
codegen_flags: <defaults>
</compile_context>

<pallas_src>
import functools

import jax
import jax.numpy as jnp
from jax.experimental import pallas as pl
from jax.experimental.pallas import tpu as pltpu

LANES = 128
MAX_BLOCK_ROWS = 4096  # (4096,128) f32 tile = 2 MiB; 3 streams x 2 bufs = 12 MiB


def _split_lanes(x):
    """Flatten to 1-D (native dtype) and split into a lane-aligned 2-D main part
    of shape (numel // 128, 128) plus a < 128-element tail.  No padding, no cast."""
    flat = jnp.ravel(x)
    n = flat.shape[0]
    rows = n // LANES
    main = flat[: rows * LANES].reshape(rows, LANES)
    tail = flat[rows * LANES:]
    return main, tail, n


def _block_rows_for(rows, max_block_rows, itemsize_min):
    if rows <= max_block_rows:
        return rows  # full-dim block, always legal
    # Non-full blocks: second-minor dim must honor the dtype-scaled sublane tile
    # (8 for 4-byte, 16 for 2-byte, 32 for 1-byte dtypes).
    mult = 8 * max(1, 4 // max(1, itemsize_min))
    br = (max_block_rows // mult) * mult
    if br == 0:
        br = mult
    return min(br, rows)


def _vmem_limit_bytes(block_rows, streams):
    stream_bytes = 2 * block_rows * LANES * sum(a.dtype.itemsize for a in streams)
    # 1.5x headroom + 2 MiB slack; floor 32 MiB, cap 48 MiB (< v7x 64 MiB/TC phys).
    return int(min(max(int(stream_bytes * 1.5) + (2 << 20), 32 << 20), 48 << 20))


def _sq_err_kernel(*args, n_in, rows, block_rows, steps_per_split,
                   mask_from_block):
    """Streams n_in inputs + targets once; accumulates squared errors into a
    (1,128) VMEM row per stream; per-split scalar sums are written in the
    epilogue of each split's inner loop."""
    in_refs = args[:n_in]
    tgt_ref = args[n_in]
    out_refs = args[n_in + 1: 2 * n_in + 1]
    acc_refs = args[2 * n_in + 1:]

    s = pl.program_id(0)          # split (core) index
    k = pl.program_id(1)          # inner streaming step

    @pl.when(k == 0)
    def _init():
        for acc in acc_refs:
            acc[...] = jnp.zeros_like(acc)

    t = tgt_ref[...].astype(jnp.float32)
    sqs = []
    for ref in in_refs:
        d = ref[...].astype(jnp.float32) - t
        sqs.append(d * d)

    def _accumulate(vals):
        for acc, v in zip(acc_refs, vals):
            acc[...] += jnp.sum(v, axis=0, keepdims=True)   # (1, LANES) partial

    if mask_from_block is None:
        _accumulate(sqs)
    else:
        blk = s * steps_per_split + k   # unclamped logical block index

        @pl.when(blk < mask_from_block)
        def _fast():
            _accumulate(sqs)

        @pl.when(blk >= mask_from_block)
        def _masked():
            row_ids = blk * block_rows + jax.lax.broadcasted_iota(
                jnp.int32, (block_rows, LANES), 0)
            valid = row_ids < rows
            _accumulate([jnp.where(valid, v, 0.0) for v in sqs])

    @pl.when(k == pl.num_programs(1) - 1)
    def _finalize():
        for out, acc in zip(out_refs, acc_refs):
            out[...] = jnp.sum(acc[...]).reshape(1, 1)


def _run_sq_err(mains, tgt_main, max_block_rows, core_split, core_parallel):
    """Returns one raw (unscaled) sum of squared errors per streamed input."""
    rows = tgt_main.shape[0]
    n_in = len(mains)
    streams = list(mains) + [tgt_main]
    itemsize_min = min(a.dtype.itemsize for a in streams)

    block_rows = _block_rows_for(rows, max_block_rows, itemsize_min)
    total_blocks = pl.cdiv(rows, block_rows)
    nsplit = max(1, min(int(core_split), total_blocks))
    steps = pl.cdiv(total_blocks, nsplit)

    if rows % block_rows != 0:
        mask_from_block = total_blocks - 1      # partial tail block (+ any overrun)
    elif nsplit * steps != total_blocks:
        mask_from_block = total_blocks          # only clamped overrun blocks
    else:
        mask_from_block = None                  # perfectly tiled: no masking at all

    def in_map(s, k):
        # Clamp overrun steps of the last split onto the final real block;
        # the kernel masks them out using the unclamped index.
        return (jnp.minimum(s * steps + k, total_blocks - 1), 0)

    in_spec = pl.BlockSpec((block_rows, LANES), in_map)
    out_spec = pl.BlockSpec((1, 1), lambda s, k: (s, 0))

    if core_parallel and nsplit > 1:
        sem0 = pltpu.CORE_PARALLEL      # v7x: shard splits across both TensorCores
    else:
        sem0 = pltpu.ARBITRARY

    kern = functools.partial(
        _sq_err_kernel, n_in=n_in, rows=rows, block_rows=block_rows,
        steps_per_split=steps, mask_from_block=mask_from_block)

    outs = pl.pallas_call(
        kern,
        out_shape=tuple(jax.ShapeDtypeStruct((nsplit, 1), jnp.float32)
                        for _ in range(n_in)),
        grid_spec=pltpu.PrefetchScalarGridSpec(
            num_scalar_prefetch=0,
            grid=(nsplit, steps),
            in_specs=[in_spec] * (n_in + 1),
            out_specs=tuple([out_spec] * n_in),
            scratch_shapes=[pltpu.VMEM((1, LANES), jnp.float32)
                            for _ in range(n_in)],
        ),
        compiler_params=pltpu.CompilerParams(
            dimension_semantics=(sem0, pltpu.ARBITRARY),
            vmem_limit_bytes=_vmem_limit_bytes(block_rows, streams)),
    )(*mains, tgt_main)
    # Sum the per-split partials (trivial: nsplit scalars).
    return [jnp.sum(o) for o in outs]


def color_loss(inputs, targets, coef=1.0, bdc=False,
               max_block_rows=MAX_BLOCK_ROWS, core_split=1, core_parallel=False):
    """JAX/Pallas equivalent of ColorLoss.forward.  `inputs` is a dict of arrays.

    On v7x pass core_split=2, core_parallel=True to use both TensorCores; the
    defaults are portable to single-core chips (v5e/v6e).
    """
    ret = {}
    has_fine = 'rgb_fine' in inputs
    n = int(targets.size)

    if n == 0:
        # torch MSE on empty tensors yields nan; return 0 instead of 0/0.
        ret['c_l'] = jnp.float32(0.0)
        if has_fine:
            ret['f_l'] = jnp.float32(0.0)
        return ret

    names = ['rgb_coarse'] + (['rgb_fine'] if has_fine else [])
    tgt_main, tgt_tail, _ = _split_lanes(targets)
    mains, tails = [], []
    for name in names:
        m, t, _ = _split_lanes(inputs[name])
        mains.append(m)
        tails.append(t)

    # Ragged tail (< 128 elements, often empty): plain-jnp squared-error sum.
    tgt_tail_f = tgt_tail.astype(jnp.float32)
    tail_sums = [jnp.sum(jnp.square(t.astype(jnp.float32) - tgt_tail_f))
                 for t in tails]

    if tgt_main.shape[0] == 0:
        sums = tail_sums
    else:
        kernel_sums = _run_sq_err(mains, tgt_main, max_block_rows,
                                  core_split, core_parallel)
        sums = [ks + ts for ks, ts in zip(kernel_sums, tail_sums)]

    inv_n = 1.0 / float(n)
    ret['c_l'] = jnp.float32(coef * 0.3 * inv_n) * sums[0]
    if has_fine:
        ret['f_l'] = jnp.float32(coef * 3.0 * inv_n) * sums[1]

    # TODO(synk): the reference's `bdc`/`dS` branch uses self.gaussian_color /
    # self.gaussian_depth, which are never defined in its __init__; omitted.
    return ret


if __name__ == "__main__":
    key = jax.random.PRNGKey(0)
    k1, k2, k3 = jax.random.split(key, 3)
    n_rays = 512
    rgb_coarse = jax.random.uniform(k1, (n_rays, 3), dtype=jnp.float32)
    rgb_fine = jax.random.uniform(k2, (n_rays, 3), dtype=jnp.float32)
    targets = jax.random.uniform(k3, (n_rays, 3), dtype=jnp.float32)

    ref_c = 0.3 * jnp.mean((rgb_coarse - targets) ** 2)
    ref_f = 3.0 * jnp.mean((rgb_fine - targets) ** 2)

    # Path 1: coarse + fine, aligned numel (512*3 = 12 lane rows), single block.
    out = color_loss({'rgb_coarse': rgb_coarse, 'rgb_fine': rgb_fine},
                     targets, coef=1.0)
    out = jax.tree_util.tree_map(jax.block_until_ready, out)
    assert jnp.allclose(out['c_l'], ref_c, rtol=1e-5, atol=1e-6)
    assert jnp.allclose(out['f_l'], ref_f, rtol=1e-5, atol=1e-6)

    # Path 2: multi-step grid with a masked partial tail block (8-row tiles).
    out_ms = color_loss({'rgb_coarse': rgb_coarse, 'rgb_fine': rgb_fine},
                        targets, coef=1.0, max_block_rows=8)
    out_ms = jax.tree_util.tree_map(jax.block_until_ready, out_ms)
    assert jnp.allclose(out_ms['c_l'], ref_c, rtol=1e-5, atol=1e-6)
    assert jnp.allclose(out_ms['f_l'], ref_f, rtol=1e-5, atol=1e-6)

    # Path 3: 2-way split grid (validates the v7x core-split indexing portably,
    # with sequential "arbitrary" semantics so it runs on any chip).
    out_sp = color_loss({'rgb_coarse': rgb_coarse, 'rgb_fine': rgb_fine},
                        targets, coef=1.0, max_block_rows=8, core_split=2)
    out_sp = jax.tree_util.tree_map(jax.block_until_ready, out_sp)
    assert jnp.allclose(out_sp['c_l'], ref_c, rtol=1e-5, atol=1e-6)
    assert jnp.allclose(out_sp['f_l'], ref_f, rtol=1e-5, atol=1e-6)

    # Path 4: coarse-only, ragged numel (1000*3 = 23 rows + 56-elem tail),
    # split grid with a clamped overrun block and a partial tail block.
    n_big = 1000
    kc, kt = jax.random.split(jax.random.PRNGKey(1))
    rc_b = jax.random.uniform(kc, (n_big, 3), dtype=jnp.float32)
    tg_b = jax.random.uniform(kt, (n_big, 3), dtype=jnp.float32)
    ref_b = 0.7 * 0.3 * jnp.mean((rc_b - tg_b) ** 2)
    out_b = color_loss({'rgb_coarse': rc_b}, tg_b, coef=0.7,
                       max_block_rows=8, core_split=2)
    out_b = jax.tree_util.tree_map(jax.block_until_ready, out_b)
    assert jnp.allclose(out_b['c_l'], ref_b, rtol=1e-5, atol=1e-6)
    assert 'f_l' not in out_b

    # Path 5: coarse-only, small ragged batch (100*3 = 2 rows + 44-elem tail).
    n_small = 100
    rc_s = rgb_coarse[:n_small]
    tg_s = targets[:n_small]
    ref_s = 2.0 * 0.3 * jnp.mean((rc_s - tg_s) ** 2)
    out_s = color_loss({'rgb_coarse': rc_s}, tg_s, coef=2.0)
    out_s = jax.tree_util.tree_map(jax.block_until_ready, out_s)
    assert jnp.allclose(out_s['c_l'], ref_s, rtol=1e-5, atol=1e-6)

    # Path 6: bf16 inputs streamed natively, upcast to f32 inside the kernel.
    rc_h = rgb_coarse.astype(jnp.bfloat16)
    tg_h = targets.astype(jnp.bfloat16)
    ref_h = 0.3 * jnp.mean(
        (rc_h.astype(jnp.float32) - tg_h.astype(jnp.float32)) ** 2)
    out_h = color_loss({'rgb_coarse': rc_h}, tg_h, coef=1.0)
    out_h = jax.tree_util.tree_map(jax.block_until_ready, out_h)
    assert jnp.allclose(out_h['c_l'], ref_h, rtol=1e-5, atol=1e-6)

    print("KERNEL_OK")
</pallas_src>

<mosaic_0001>
module attributes {stable_mosaic.version = 11 : i64} {
  func.func @_sq_err_kernel(%arg0: i32, %arg1: i32, %arg2: memref<12x128xf32, #tpu.memory_space<vmem>>, %arg3: memref<12x128xf32, #tpu.memory_space<vmem>>, %arg4: memref<12x128xf32, #tpu.memory_space<vmem>>, %arg5: memref<1x1xf32, #tpu.memory_space<vmem>>, %arg6: memref<1x1xf32, #tpu.memory_space<vmem>>, %arg7: memref<1x128xf32, #tpu.memory_space<vmem>>, %arg8: memref<1x128xf32, #tpu.memory_space<vmem>>) attributes {dimension_semantics = [#tpu.dimension_semantics<arbitrary>, #tpu.dimension_semantics<arbitrary>], iteration_bounds = array<i64: 1, 1>, scalar_prefetch = 0 : i64, scratch_operands = 2 : i64, tpu.core_type = #tpu.core_type<tc>, window_params = [{transform_indices = @transform_0, window_bounds = array<i64: 12, 128>}, {transform_indices = @transform_1, window_bounds = array<i64: 12, 128>}, {transform_indices = @transform_2, window_bounds = array<i64: 12, 128>}, {transform_indices = @transform_3, window_bounds = array<i64: 1, 1>}, {transform_indices = @transform_4, window_bounds = array<i64: 1, 1>}]} {
    %c0_i32 = arith.constant 0 : i32
    %0 = arith.cmpi eq, %arg1, %c0_i32 : i32
    %1 = arith.extui %0 : i1 to i32
    %c0_i32_0 = arith.constant 0 : i32
    %2 = arith.cmpi ne, %1, %c0_i32_0 : i32
    scf.if %2 {
      %cst_17 = arith.constant 0.000000e+00 : f32
      %23 = vector.broadcast %cst_17 : f32 to vector<1x128xf32>
      %c0_18 = arith.constant 0 : index
      %c0_19 = arith.constant 0 : index
      %24 = vector.load %arg7[%c0_18, %c0_19] : memref<1x128xf32, #tpu.memory_space<vmem>>, vector<1x128xf32>
      tpu.vector_store %arg7[%c0_18, %c0_19], %23 {strides = array<i32>} : memref<1x128xf32, #tpu.memory_space<vmem>>, vector<1x128xf32>,
      %cst_20 = arith.constant 0.000000e+00 : f32
      %25 = vector.broadcast %cst_20 : f32 to vector<1x128xf32>
      %c0_21 = arith.constant 0 : index
      %c0_22 = arith.constant 0 : index
      %26 = vector.load %arg8[%c0_21, %c0_22] : memref<1x128xf32, #tpu.memory_space<vmem>>, vector<1x128xf32>
      tpu.vector_store %arg8[%c0_21, %c0_22], %25 {strides = array<i32>} : memref<1x128xf32, #tpu.memory_space<vmem>>, vector<1x128xf32>,
    } else {
    }
    %c0 = arith.constant 0 : index
    %c0_1 = arith.constant 0 : index
    %3 = vector.load %arg4[%c0, %c0_1] : memref<12x128xf32, #tpu.memory_space<vmem>>, vector<12x128xf32>
    %c0_2 = arith.constant 0 : index
    %c0_3 = arith.constant 0 : index
    %4 = vector.load %arg2[%c0_2, %c0_3] : memref<12x128xf32, #tpu.memory_space<vmem>>, vector<12x128xf32>
    %5 = arith.subf %4, %3 : vector<12x128xf32>
    %6 = arith.mulf %5, %5 : vector<12x128xf32>
    %c0_4 = arith.constant 0 : index
    %c0_5 = arith.constant 0 : index
    %7 = vector.load %arg3[%c0_4, %c0_5] : memref<12x128xf32, #tpu.memory_space<vmem>>, vector<12x128xf32>
    %8 = arith.subf %7, %3 : vector<12x128xf32>
    %9 = arith.mulf %8, %8 : vector<12x128xf32>
    %c0_6 = arith.constant 0 : index
    %c0_7 = arith.constant 0 : index
    %10 = vector.load %arg7[%c0_6, %c0_7] : memref<1x128xf32, #tpu.memory_space<vmem>>, vector<1x128xf32>
    %cst = arith.constant dense<0.000000e+00> : vector<128xf32>
    %11 = vector.multi_reduction <add>, %6, %cst [0] : vector<12x128xf32> to vector<128xf32>
    %12 = vector.shape_cast %11 : vector<128xf32> to vector<1x128xf32>
    %13 = arith.addf %10, %12 : vector<1x128xf32>
    %c0_8 = arith.constant 0 : index
    %c0_9 = arith.constant 0 : index
    %14 = vector.load %arg7[%c0_8, %c0_9] : memref<1x128xf32, #tpu.memory_space<vmem>>, vector<1x128xf32>
    tpu.vector_store %arg7[%c0_8, %c0_9], %13 {strides = array<i32>} : memref<1x128xf32, #tpu.memory_space<vmem>>, vector<1x128xf32>,
    %c0_10 = arith.constant 0 : index
    %c0_11 = arith.constant 0 : index
    %15 = vector.load %arg8[%c0_10, %c0_11] : memref<1x128xf32, #tpu.memory_space<vmem>>, vector<1x128xf32>
    %cst_12 = arith.constant dense<0.000000e+00> : vector<128xf32>
    %16 = vector.multi_reduction <add>, %9, %cst_12 [0] : vector<12x128xf32> to vector<128xf32>
    %17 = vector.shape_cast %16 : vector<128xf32> to vector<1x128xf32>
    %18 = arith.addf %15, %17 : vector<1x128xf32>
    %c0_13 = arith.constant 0 : index
    %c0_14 = arith.constant 0 : index
    %19 = vector.load %arg8[%c0_13, %c0_14] : memref<1x128xf32, #tpu.memory_space<vmem>>, vector<1x128xf32>
    tpu.vector_store %arg8[%c0_13, %c0_14], %18 {strides = array<i32>} : memref<1x128xf32, #tpu.memory_space<vmem>>, vector<1x128xf32>,
    %c0_i32_15 = arith.constant 0 : i32
    %20 = arith.cmpi eq, %arg1, %c0_i32_15 : i32
    %21 = arith.extui %20 : i1 to i32
    %c0_i32_16 = arith.constant 0 : i32
    %22 = arith.cmpi ne, %21, %c0_i32_16 : i32
    scf.if %22 {
      %c0_17 = arith.constant 0 : index
      %c0_18 = arith.constant 0 : index
      %23 = vector.load %arg7[%c0_17, %c0_18] : memref<1x128xf32, #tpu.memory_space<vmem>>, vector<1x128xf32>
      %24 = vector.shape_cast %23 : vector<1x128xf32> to vector<1x1x128xf32>
      %cst_19 = arith.constant dense<0.000000e+00> : vector<1xf32>
      %25 = vector.multi_reduction <add>, %24, %cst_19 [1, 2] : vector<1x1x128xf32> to vector<1xf32>
      %26 = vector.shape_cast %25 : vector<1xf32> to vector<1x1x1xf32>
      %27 = vector.extract %26[0, 0, 0] : f32 from vector<1x1x1xf32>
      %28 = vector.broadcast %27 : f32 to vector<1x1xf32>
      %c0_20 = arith.constant 0 : index
      %c0_21 = arith.constant 0 : index
      %29 = vector.load %arg5[%c0_20, %c0_21] : memref<1x1xf32, #tpu.memory_space<vmem>>, vector<1x1xf32>
      tpu.vector_store %arg5[%c0_20, %c0_21], %28 {strides = array<i32>} : memref<1x1xf32, #tpu.memory_space<vmem>>, vector<1x1xf32>,
      %c0_22 = arith.constant 0 : index
      %c0_23 = arith.constant 0 : index
      %30 = vector.load %arg8[%c0_22, %c0_23] : memref<1x128xf32, #tpu.memory_space<vmem>>, vector<1x128xf32>
      %31 = vector.shape_cast %30 : vector<1x128xf32> to vector<1x1x128xf32>
      %cst_24 = arith.constant dense<0.000000e+00> : vector<1xf32>
      %32 = vector.multi_reduction <add>, %31, %cst_24 [1, 2] : vector<1x1x128xf32> to vector<1xf32>
      %33 = vector.shape_cast %32 : vector<1xf32> to vector<1x1x1xf32>
      %34 = vector.extract %33[0, 0, 0] : f32 from vector<1x1x1xf32>
      %35 = vector.broadcast %34 : f32 to vector<1x1xf32>
      %c0_25 = arith.constant 0 : index
      %c0_26 = arith.constant 0 : index
      %36 = vector.load %arg6[%c0_25, %c0_26] : memref<1x1xf32, #tpu.memory_space<vmem>>, vector<1x1xf32>
      tpu.vector_store %arg6[%c0_25, %c0_26], %35 {strides = array<i32>} : memref<1x1xf32, #tpu.memory_space<vmem>>, vector<1x1xf32>,
    } else {
    }
    return
  }
  func.func @transform_0(%arg0: i32, %arg1: i32) -> (i32, i32) {
    %c1_i32 = arith.constant 1 : i32
    %0 = arith.muli %arg0, %c1_i32 : i32
    %1 = arith.addi %0, %arg1 : i32
    %c0_i32 = arith.constant 0 : i32
    %2 = arith.minsi %1, %c0_i32 : i32
    %c0_i32_0 = arith.constant 0 : i32
    %c0_i32_1 = arith.constant 0 : i32
    return %2, %c0_i32_0 : i32, i32
  }
  func.func @transform_1(%arg0: i32, %arg1: i32) -> (i32, i32) {
    %c1_i32 = arith.constant 1 : i32
    %0 = arith.muli %arg0, %c1_i32 : i32
    %1 = arith.addi %0, %arg1 : i32
    %c0_i32 = arith.constant 0 : i32
    %2 = arith.minsi %1, %c0_i32 : i32
    %c0_i32_0 = arith.constant 0 : i32
    %c0_i32_1 = arith.constant 0 : i32
    return %2, %c0_i32_0 : i32, i32
  }
  func.func @transform_2(%arg0: i32, %arg1: i32) -> (i32, i32) {
    %c1_i32 = arith.constant 1 : i32
    %0 = arith.muli %arg0, %c1_i32 : i32
    %1 = arith.addi %0, %arg1 : i32
    %c0_i32 = arith.constant 0 : i32
    %2 = arith.minsi %1, %c0_i32 : i32
    %c0_i32_0 = arith.constant 0 : i32
    %c0_i32_1 = arith.constant 0 : i32
    return %2, %c0_i32_0 : i32, i32
  }
  func.func @transform_3(%arg0: i32, %arg1: i32) -> (i32, i32) {
    %c0_i32 = arith.constant 0 : i32
    %c0_i32_0 = arith.constant 0 : i32
    return %arg0, %c0_i32 : i32, i32
  }
  func.func @transform_4(%arg0: i32, %arg1: i32) -> (i32, i32) {
    %c0_i32 = arith.constant 0 : i32
    %c0_i32_0 = arith.constant 0 : i32
    return %arg0, %c0_i32 : i32, i32
  }
}

</mosaic_0001>

<bundles_post_ra>
// kernel: tpu_custom_call.1
= control target key start
LH: loop header
LB: loop body
LE: loop exit
PB: predicated region body
PF: predicated region fallthrough
CT: control target
= control target key end

     0   :  { %10 = vsyncpa [#allocation5], 0  ;;  %s440_s0 = inlined_call_operand.hbm [shape: f32[12,128], index: 0, kind: input, shape index: {}]   ;;  %s441_s1 = inlined_call_operand.hbm [shape: f32[12,128], index: 1, kind: input, shape index: {}]   ;;  %s442_s2 = inlined_call_operand.hbm [shape: f32[12,128], index: 2, kind: input, shape index: {}]   ;;  %s443_s3 = inlined_call_operand.hbm [shape: f32[1,1], index: 3, kind: output, shape index: {0}]   ;;  %s444_s4 = inlined_call_operand.hbm [shape: f32[1,1], index: 4, kind: output, shape index: {1}]  }
   0x1   :  { %11 = vsyncpa [#allocation8], 0 }
   0x2   :  { %12 = vsyncpa [#allocation6], 0 }
   0x3   :  { %13 = vsyncpa [#allocation12], 0  ;;  %s329_s15 = smov [#allocation7]   ;;  %s330_s17 = smov [#allocation4]  }
   0x4   :  { %s43_s16 = sshll.u32 %s329_s15, 4  ;;  %s25_s18 = sshll.u32 %s330_s17, 4  ;;  %s44_s16 = int_to_ptr.vmem [resolvable:$true] %s43_s16  ;;  %s362_s18 = int_to_ptr.vmem [resolvable:$true] %s25_s18 }
   0x5   :  { %s211_s21 = scalar_lea.hbm %s441_s1, 256 }
   0x6   :  { %p212_p0 = scmp.ne.s32.totalorder %s441_s1, %s211_s21  ;;  %p215_p1 = scmp.lt.u32.totalorder %s211_s21, %s441_s1 }
   0x8   :  { %p217_p2 = pnand %p215_p1, %p212_p0 }
   0xa   :  { %220 = shalt.err (!%p217_p2)
}
   0xb   :  { %s221_s26 = scalar_lea.vmem %s44_s16, 256  ;;  %p226_p4 = scmp.lt.s32.totalorder %s44_s16, %s44_s16 }
   0xc   :  { %p222_p3 = scmp.ne.s32.totalorder %s44_s16, %s221_s26  ;;  %p227_p5 = scmp.lt.s32.totalorder %s221_s26, %s221_s26 }
   0xe   :  { %p228_p6 = por %p227_p5, %p226_p4 }
  0x10   :  { %p229_p7 = pnand %p228_p6, %p222_p3 }
  0x12   :  { %232 = shalt.err (!%p229_p7)
}
  0x13   :  { %s331_s27 = smov 128   ;;  %s332_s28 = smov 8  }
  0x14   :  { %49 = dma.hbm_to_vmem [thread:$0]  %s441_s1, 256, %s44_s16, [#allocation8], %s331_s27, %s331_s27, %s332_s28  }
  0x15   :  { %s233_s7 = scalar_lea.hbm %s440_s0, 256 }
  0x16   :  { %p234_p8 = scmp.ne.s32.totalorder %s440_s0, %s233_s7  ;;  %p237_p9 = scmp.lt.u32.totalorder %s233_s7, %s440_s0 }
  0x18   :  { %p239_p10 = pnand %p237_p9, %p234_p8 }
  0x1a   :  { %242 = shalt.err (!%p239_p10)
}
  0x1b   :  { %s243_s12 = scalar_lea.vmem %s362_s18, 256  ;;  %p248_p12 = scmp.lt.s32.totalorder %s362_s18, %s362_s18 }
  0x1c   :  { %p244_p11 = scmp.ne.s32.totalorder %s362_s18, %s243_s12  ;;  %p249_p13 = scmp.lt.s32.totalorder %s243_s12, %s243_s12 }
  0x1e   :  { %p250_p0 = por %p249_p13, %p248_p12 }
  0x20   :  { %p251_p1 = pnand %p250_p0, %p244_p11 }
  0x22   :  { %254 = shalt.err (!%p251_p1)
}
  0x23   :  { %31 = dma.hbm_to_vmem [thread:$0]  %s440_s0, 256, %s362_s18, [#allocation5], %s331_s27, %s331_s27, %s332_s28  }
  0x24   :  { %s333_s14 = smov [#allocation9]   ;;  %s255_s19 = scalar_lea.hbm %s442_s2, 256 }
  0x25   :  { %s61_s15 = sshll.u32 %s333_s14, 4  ;;  %p256_p2 = scmp.ne.s32.totalorder %s442_s2, %s255_s19  ;;  %s62_s15 = int_to_ptr.vmem [resolvable:$true] %s61_s15 }
  0x26   :  { %p259_p3 = scmp.lt.u32.totalorder %s255_s19, %s442_s2 }
  0x28   :  { %p261_p4 = pnand %p259_p3, %p256_p2 }
  0x2a   :  { %264 = shalt.err (!%p261_p4)
}
  0x2b   :  { %s265_s24 = scalar_lea.vmem %s62_s15, 256  ;;  %p270_p6 = scmp.lt.s32.totalorder %s62_s15, %s62_s15 }
  0x2c   :  { %p266_p5 = scmp.ne.s32.totalorder %s62_s15, %s265_s24  ;;  %p271_p7 = scmp.lt.s32.totalorder %s265_s24, %s265_s24 }
  0x2e   :  { %p272_p8 = por %p271_p7, %p270_p6 }
  0x30   :  { %p273_p9 = pnand %p272_p8, %p266_p5 }
  0x32   :  { %276 = shalt.err (!%p273_p9)
}
  0x33   :  { %67 = dma.hbm_to_vmem [thread:$0]  %s442_s2, 256, %s62_s15, [#allocation8], %s331_s27, %s331_s27, %s332_s28  }
  0x34   :  { %321 = dma.done.wait [#allocation5], 256  }
  0x35   :  { %322 = vsyncadd [#allocation5], 4294967040 }
  0x36   :  { %323 = dma.done.wait [#allocation8], 512  }
  0x37   :  { %324 = vsyncadd [#allocation8], 4294966784  ;;  %v334_v0 = vmov 0.0   ;;  %v95_v1 = vld [vmem:[#allocation9] sm:$0xff]  ;;  %v96_v2 = vld [vmem:[#allocation9 + $0x8] sm:$0xf] }
  0x38   :  { %93 = vst [vmem:[#allocation2] sm:$0x1] %v334_v0  ;;  %94 = vst [vmem:[#allocation3] sm:$0x1] %v334_v0  ;;  %v97_v3 = vld [vmem:[#allocation4] sm:$0xff]  ;;  %v103_v6 = vld [vmem:[#allocation7] sm:$0xff] }
  0x39   :  { %v98_v4 = vld [vmem:[#allocation4 + $0x8] sm:$0xf]  ;;  %v99_v5 = vsub.f32 %v97_v3, %v95_v1  ;;  %v104_v8 = vld [vmem:[#allocation7 + $0x8] sm:$0xf]  ;;  %v105_v9 = vsub.f32 %v103_v6, %v95_v1  ;;  %vm110_vm0 = vcmask 1043456   ;;  %vm136_vm1 = vcmask 1040384  }
  0x3a   :  { %v100_v7 = vsub.f32 %v98_v4, %v96_v2  ;;  %v106_v11 = vsub.f32 %v104_v8, %v96_v2  ;;  %s335_s2 = smov [#allocation10]   ;;  %vm148_vm2 = vcmask 0   ;;  %s336_s27 = smov [#allocation11]  }
  0x3b   :  { %v101_v10 = vmul.f32 %v99_v5, %v99_v5  ;;  %v107_v13 = vmul.f32 %v105_v9, %v105_v9  ;;  %s169_s25 = sshll.u32 %s335_s2, 4  ;;  %s179_s28 = sshll.u32 %s336_s27, 4  ;;  %s170_s25 = int_to_ptr.vmem [resolvable:$true] %s169_s25  ;;  %s180_s28 = int_to_ptr.vmem [resolvable:$true] %s179_s28 }
  0x3c   :  { %v102_v12 = vmul.f32 %v100_v7, %v100_v7  ;;  %v108_v14 = vmul.f32 %v106_v11, %v106_v11  ;;  %s277_s29 = scalar_lea.vmem %s170_s25, 16  ;;  %s281_s30 = scalar_lea.vmem %s170_s25, 32 }
  0x3d   :  { %p278_p10 = scmp.ne.s32.totalorder %s170_s25, %s277_s29  ;;  %p282_p11 = scmp.lt.s32.totalorder %s170_s25, %s170_s25 }
  0x3e   :  { %v111_v15 = vsel %vm110_vm0, %v102_v12, 0.0  ;;  %v122_v17 = vsel %vm110_vm0, %v108_v14, 0.0  ;;  %p283_p12 = scmp.lt.s32.totalorder %s281_s30, %s277_s29 }
  0x3f   :  { %v112_v16 = vadd.f32 %v111_v15, %v101_v10  ;;  %v123_v18 = vadd.f32 %v122_v17, %v107_v13  ;;  %v109_v28 = vld [vmem:[#allocation2] sm:$0x1]  ;;  %v121_v31 = vld [vmem:[#allocation3] sm:$0x1] }
  0x40   :  { %p284_p13 = por %p283_p12, %p282_p11 }
  0x41   :  { %v113_v19 = vrot.slane %v112_v16, 4  ;;  %v124_v20 = vrot.slane %v123_v18, 4 }
  0x42   :  { %p285_p0 = pnand %p284_p13, %p278_p10 }
  0x43   :  { %v114_v21 = vadd.f32 %v113_v19, %v112_v16  ;;  %v125_v22 = vadd.f32 %v124_v20, %v123_v18 }
  0x45   :  { %v115_v23 = vrot.slane %v114_v21, 2  ;;  %v126_v24 = vrot.slane %v125_v22, 2 }
  0x47   :  { %v116_v25 = vadd.f32 %v115_v23, %v114_v21  ;;  %v127_v26 = vadd.f32 %v126_v24, %v125_v22 }
  0x49   :  { %v117_v27 = vrot.slane %v116_v25, 1  ;;  %v128_v29 = vrot.slane %v127_v26, 1 }
  0x4b   :  { %v118_v30 = vadd.f32 %v117_v27, %v116_v25  ;;  %v129_v32 = vadd.f32 %v128_v29, %v127_v26 }
  0x4d   :  { %v119_v33 = vadd.f32 %v118_v30, %v109_v28  ;;  %v130_v34 = vadd.f32 %v129_v32, %v121_v31 }
  0x4f   :  { %120 = vst [vmem:[#allocation2] sm:$0x1] %v119_v33  ;;  %131 = vst [vmem:[#allocation3] sm:$0x1] %v130_v34 }
  0x56   :  { %v135_v35 = vld [vmem:[#allocation2] sm:$0x1]  ;;  %v150_v37 = vld [vmem:[#allocation3] sm:$0x1] }
  0x57   :  { %v137_v36 = vsel %vm136_vm1, %v135_v35, 0.0  ;;  %v151_v38 = vsel %vm136_vm1, %v150_v37, 0.0 }
  0x58   :  { %138 = vadd.xlane.f32.xlu0 %v137_v36 }
  0x5c   :  { %152 = vadd.xlane.f32.xlu0 %v151_v38 }
  0xe5   :  { %v139_v39 = vpop.xlane.xlu0 %138 }
  0xe6   :  { %v140_v40 = vrot.slane %v139_v39, 4 }
  0xe8   :  { %v141_v41 = vadd.f32 %v140_v40, %v139_v39 }
  0xe9   :  { %v153_v42 = vpop.xlane.xlu0 %152 }
  0xea   :  { %v142_v43 = vrot.slane %v141_v41, 2  ;;  %v154_v44 = vrot.slane %v153_v42, 4 }
  0xec   :  { %v155_v45 = vadd.f32 %v154_v44, %v153_v42  ;;  %v143_v46 = vadd.f32 %v142_v43, %v141_v41 }
  0xee   :  { %v156_v47 = vrot.slane %v155_v45, 2  ;;  %v144_v48 = vrot.slane %v143_v46, 1 }
  0xf0   :  { %v157_v49 = vadd.f32 %v156_v47, %v155_v45  ;;  %v145_v50 = vadd.f32 %v144_v48, %v143_v46 }
  0xf2   :  { %199 = vpush %v145_v50  ;;  %v158_v51 = vrot.slane %v157_v49, 1 }
  0xf4   :  { %v159_v52 = vadd.f32 %v158_v51, %v157_v49 }
  0xf6   :  { %201 = vpush %v159_v52 }
 0x123   :  { %s200_s26 = spop %199 }
 0x124   :  { %v147_v53 = vstv %s200_s26 }
 0x125   :  { %149 = vst.msk [vmem:[#allocation10] sm:$0x1] %vm148_vm2, %v147_v53 }
 0x126   :  { %288 = shalt.err (!%p285_p0)
}
 0x127   :  { %s289_s7 = scalar_lea.hbm %s443_s3, 16 }
 0x128   :  { %p290_p1 = scmp.ne.s32.totalorder %s443_s3, %s289_s7  ;;  %p293_p2 = scmp.lt.u32.totalorder %s289_s7, %s443_s3 }
 0x12a   :  { %p295_p3 = pnand %p293_p2, %p290_p1 }
 0x12c   :  { %298 = shalt.err (!%p295_p3)
}
 0x12d   :  { %172 = dma.vmem_to_hbm [thread:$0]  %s170_s25, 16, %s443_s3, [#allocation6]  }
 0x12e   :  { %s202_s13 = spop %201  ;;  %s299_s14 = scalar_lea.vmem %s180_s28, 16 }
 0x12f   :  { %v161_v54 = vstv %s202_s13  ;;  %p300_p4 = scmp.ne.s32.totalorder %s180_s28, %s299_s14  ;;  %s303_s15 = scalar_lea.vmem %s180_s28, 32 }
 0x130   :  { %162 = vst.msk [vmem:[#allocation11] sm:$0x1] %vm148_vm2, %v161_v54  ;;  %p304_p5 = scmp.lt.s32.totalorder %s180_s28, %s180_s28  ;;  %p305_p6 = scmp.lt.s32.totalorder %s303_s15, %s299_s14 }
 0x132   :  { %p306_p7 = por %p305_p6, %p304_p5 }
 0x134   :  { %p307_p8 = pnand %p306_p7, %p300_p4 }
 0x136   :  { %310 = shalt.err (!%p307_p8)
}
 0x137   :  { %s311_s19 = scalar_lea.hbm %s444_s4, 16 }
 0x138   :  { %p312_p9 = scmp.ne.s32.totalorder %s444_s4, %s311_s19  ;;  %p315_p10 = scmp.lt.u32.totalorder %s311_s19, %s444_s4 }
 0x13a   :  { %p317_p11 = pnand %p315_p10, %p312_p9 }
 0x13c   :  { %320 = shalt.err (!%p317_p11)
}
 0x13d   :  { %182 = dma.vmem_to_hbm [thread:$0]  %s180_s28, 16, %s444_s4, [#allocation12]  }
 0x13e   :  { %325 = dma.done.wait [#allocation6], 16  }
 0x13f   :  { %326 = vsyncadd [#allocation6], 4294967280 }
 0x140   :  { %327 = dma.done.wait [#allocation12], 16  }
 0x141   :  { %328 = vsyncadd [#allocation12], 4294967280 }
 0x142   :  { %189 = vsyncpa [#allocation5], 1 }
 0x143   :  { %190 = vsyncpa [#allocation8], 1 }
 0x144   :  { %191 = vsyncpa [#allocation6], 1 }
 0x145   :  { %192 = vsyncpa [#allocation12], 1 }

</bundles_post_ra>
